<compile_context>
chip_gen: v6e
topology: v6e:2x2x1
jax: 0.10.0
libtpu: 0.0.40
codegen_flags: <defaults>
</compile_context>

<pallas_src>
import functools

import jax
import jax.numpy as jnp
from jax.experimental import pallas as pl
from jax.experimental.pallas import tpu as pltpu

_BN_EPS = 1e-5


def _fc_bn_relu_dropout_kernel(*refs, keep_threshold, apply_dropout):
    if apply_dropout:
        x_ref, w_ref, b_ref, g_ref, be_ref, bits_ref, o_ref = refs
    else:
        x_ref, w_ref, b_ref, g_ref, be_ref, o_ref = refs
        bits_ref = None

    # ---- Linear: (N, D) . (TH, D)^T -> (N, TH); bf16 operands, f32 accumulate.
    y = jax.lax.dot_general(
        x_ref[...], w_ref[...],
        dimension_numbers=(((1,), (1,)), ((), ())),
        preferred_element_type=jnp.float32,
    ) + b_ref[...]

    # ---- BatchNorm1d (training semantics: biased per-feature batch stats) ----
    mean = jnp.mean(y, axis=0, keepdims=True)          # (1, TH)
    d = y - mean
    var = jnp.mean(d * d, axis=0, keepdims=True)
    # gamma/beta already carry the inverted-dropout scale 1/(1-p).
    y_bn = d * jax.lax.rsqrt(var + _BN_EPS) * g_ref[...] + be_ref[...]

    # ---- ReLU ----
    y_relu = jnp.maximum(y_bn, 0.0)

    # ---- Dropout (training, inverted dropout; scale already folded in) ----
    if apply_dropout:
        keep = bits_ref[...] >= jnp.uint32(keep_threshold)
        y_relu = jnp.where(keep, y_relu, 0.0)

    o_ref[...] = y_relu


def fc_bn_relu_dropout(x, weight, bias, gamma, beta, *, drop_p=0.5, seed=0,
                       block_h=128):
    """x: (N, input_dim) f32.  weight: (hidden, input_dim) (PyTorch layout)."""
    n, d = x.shape
    h = weight.shape[0]

    if drop_p >= 1.0:
        # Everything is dropped (PyTorch returns all-zeros; 1/(1-p) undefined).
        return jnp.zeros((n, h), jnp.float32)
    apply_dropout = drop_p > 0.0
    scale = 1.0 / (1.0 - drop_p) if apply_dropout else 1.0

    # Pad hidden up to a lane-dense multiple of block_h (>= 128).
    assert block_h % 128 == 0
    h_pad = ((h + block_h - 1) // block_h) * block_h
    pad = h_pad - h

    # bf16 MXU operands; weight stays in (H, D) layout (no transpose copy).
    x_bf = x.astype(jnp.bfloat16)
    w_bf = jnp.pad(weight, ((0, pad), (0, 0))).astype(jnp.bfloat16)
    b2 = jnp.pad(bias, (0, pad)).reshape(1, h_pad).astype(jnp.float32)
    g2 = jnp.pad(gamma * scale, (0, pad)).reshape(1, h_pad).astype(jnp.float32)
    be2 = jnp.pad(beta * scale, (0, pad)).reshape(1, h_pad).astype(jnp.float32)

    in_specs = [
        pl.BlockSpec((n, d), lambda j: (0, 0)),          # x (full batch, BN)
        pl.BlockSpec((block_h, d), lambda j: (j, 0)),    # weight tile (TH, D)
        pl.BlockSpec((1, block_h), lambda j: (0, j)),    # bias
        pl.BlockSpec((1, block_h), lambda j: (0, j)),    # gamma * 1/(1-p)
        pl.BlockSpec((1, block_h), lambda j: (0, j)),    # beta  * 1/(1-p)
    ]
    args = [x_bf, w_bf, b2, g2, be2]

    keep_threshold = 0
    if apply_dropout:
        # TODO(synk): mask bits are generated host-side via jax.random (unique
        # per H-tile); the in-kernel pltpu.prng_* path has no CPU/interpret
        # lowering, and the RNG stream differs from torch's by design.
        keep_threshold = min(int(round(drop_p * 2.0 ** 32)), 2 ** 32 - 1)
        bits = jax.random.bits(jax.random.PRNGKey(seed), (n, h_pad), jnp.uint32)
        in_specs.append(pl.BlockSpec((n, block_h), lambda j: (0, j)))
        args.append(bits)

    kernel = functools.partial(
        _fc_bn_relu_dropout_kernel,
        keep_threshold=keep_threshold,
        apply_dropout=apply_dropout,
    )

    out = pl.pallas_call(
        kernel,
        out_shape=jax.ShapeDtypeStruct((n, h_pad), jnp.float32),
        grid=(h_pad // block_h,),
        in_specs=in_specs,
        out_specs=pl.BlockSpec((n, block_h), lambda j: (0, j)),
        compiler_params=pltpu.CompilerParams(
            dimension_semantics=("parallel",),
        ),
    )(*args)

    # TODO(synk): BatchNorm1d running_mean/running_var buffers are not
    # computed/updated; only the training-mode forward (batch stats) is done.
    return out[:, :h]


if __name__ == "__main__":
    # Small shapes consistent with the module: batch=8, input_dim=32, hidden=64.
    N, INPUT_DIM, HIDDEN = 8, 32, 64
    DROP_P = 0.5

    key = jax.random.PRNGKey(0)
    kx, kw, kb = jax.random.split(key, 3)

    x = jax.random.normal(kx, (N, INPUT_DIM), dtype=jnp.float32)

    # Deterministic parameter init (PyTorch Linear default: U(-1/sqrt(D), 1/sqrt(D)))
    bound = 1.0 / (INPUT_DIM ** 0.5)
    weight = jax.random.uniform(kw, (HIDDEN, INPUT_DIM), jnp.float32,
                                minval=-bound, maxval=bound)
    bias = jax.random.uniform(kb, (HIDDEN,), jnp.float32,
                              minval=-bound, maxval=bound)
    gamma = jnp.ones((HIDDEN,), jnp.float32)   # BatchNorm1d weight init
    beta = jnp.zeros((HIDDEN,), jnp.float32)   # BatchNorm1d bias init

    out = fc_bn_relu_dropout(x, weight, bias, gamma, beta,
                             drop_p=DROP_P, seed=0)
    out = jax.block_until_ready(out)

    assert out.shape == (N, HIDDEN)
    assert bool(jnp.all(jnp.isfinite(out)))
    assert bool(jnp.all(out >= 0.0))   # ReLU + dropout keeps outputs >= 0
    print("KERNEL_OK")
</pallas_src>

<mosaic_0001>
module attributes {stable_mosaic.version = 11 : i64} {
  func.func @_fc_bn_relu_dropout_kernel(%arg0: i32, %arg1: memref<8x32xbf16, #tpu.memory_space<vmem>>, %arg2: memref<128x32xbf16, #tpu.memory_space<vmem>>, %arg3: memref<1x128xf32, #tpu.memory_space<vmem>>, %arg4: memref<1x128xf32, #tpu.memory_space<vmem>>, %arg5: memref<1x128xf32, #tpu.memory_space<vmem>>, %arg6: memref<8x128xi32, #tpu.memory_space<vmem>>, %arg7: memref<8x128xf32, #tpu.memory_space<vmem>>) attributes {dimension_semantics = [#tpu.dimension_semantics<parallel>], iteration_bounds = array<i64: 1>, scalar_prefetch = 0 : i64, scratch_operands = 0 : i64, tpu.core_type = #tpu.core_type<tc>, window_params = [{pipeline_mode = #tpu.pipeline_mode<synchronous>, transform_indices = @transform_0, window_bounds = array<i64: 8, 32>}, {transform_indices = @transform_1, window_bounds = array<i64: 128, 32>}, {transform_indices = @transform_2, window_bounds = array<i64: 1, 128>}, {transform_indices = @transform_3, window_bounds = array<i64: 1, 128>}, {transform_indices = @transform_4, window_bounds = array<i64: 1, 128>}, {transform_indices = @transform_5, window_bounds = array<i64: 8, 128>}, {transform_indices = @transform_6, window_bounds = array<i64: 8, 128>}]} {
    %c0 = arith.constant 0 : index
    %c0_0 = arith.constant 0 : index
    %0 = vector.load %arg1[%c0, %c0_0] : memref<8x32xbf16, #tpu.memory_space<vmem>>, vector<8x32xbf16>
    %c0_1 = arith.constant 0 : index
    %c0_2 = arith.constant 0 : index
    %1 = vector.load %arg2[%c0_1, %c0_2] : memref<128x32xbf16, #tpu.memory_space<vmem>>, vector<128x32xbf16>
    %cst = arith.constant dense<0.000000e+00> : vector<8x128xf32>
    %2 = tpu.matmul %0, %1, %cst {dimension_numbers = #tpu.dot_dimension_numbers<[1], [1], [0], [0], [0, 0, 1, 0], [], []>} : vector<8x32xbf16>, vector<128x32xbf16>, vector<8x128xf32> -> vector<8x128xf32>
    %c0_3 = arith.constant 0 : index
    %c0_4 = arith.constant 0 : index
    %3 = vector.load %arg3[%c0_3, %c0_4] : memref<1x128xf32, #tpu.memory_space<vmem>>, vector<1x128xf32>
    %4 = vector.broadcast %3 : vector<1x128xf32> to vector<8x128xf32>
    %5 = arith.addf %2, %4 : vector<8x128xf32>
    %cst_5 = arith.constant dense<0.000000e+00> : vector<128xf32>
    %6 = vector.multi_reduction <add>, %5, %cst_5 [0] : vector<8x128xf32> to vector<128xf32>
    %7 = vector.shape_cast %6 : vector<128xf32> to vector<1x128xf32>
    %cst_6 = arith.constant 8.000000e+00 : f32
    %8 = vector.broadcast %cst_6 : f32 to vector<1x128xf32>
    %9 = arith.divf %7, %8 : vector<1x128xf32>
    %10 = vector.broadcast %9 : vector<1x128xf32> to vector<8x128xf32>
    %11 = arith.subf %5, %10 : vector<8x128xf32>
    %12 = arith.mulf %11, %11 : vector<8x128xf32>
    %cst_7 = arith.constant dense<0.000000e+00> : vector<128xf32>
    %13 = vector.multi_reduction <add>, %12, %cst_7 [0] : vector<8x128xf32> to vector<128xf32>
    %14 = vector.shape_cast %13 : vector<128xf32> to vector<1x128xf32>
    %cst_8 = arith.constant 8.000000e+00 : f32
    %15 = vector.broadcast %cst_8 : f32 to vector<1x128xf32>
    %16 = arith.divf %14, %15 : vector<1x128xf32>
    %cst_9 = arith.constant 9.99999974E-6 : f32
    %17 = vector.broadcast %cst_9 : f32 to vector<1x128xf32>
    %18 = arith.addf %16, %17 : vector<1x128xf32>
    %19 = math.rsqrt %18 : vector<1x128xf32>
    %20 = vector.broadcast %19 : vector<1x128xf32> to vector<8x128xf32>
    %21 = arith.mulf %11, %20 : vector<8x128xf32>
    %c0_10 = arith.constant 0 : index
    %c0_11 = arith.constant 0 : index
    %22 = vector.load %arg4[%c0_10, %c0_11] : memref<1x128xf32, #tpu.memory_space<vmem>>, vector<1x128xf32>
    %23 = vector.broadcast %22 : vector<1x128xf32> to vector<8x128xf32>
    %24 = arith.mulf %21, %23 : vector<8x128xf32>
    %c0_12 = arith.constant 0 : index
    %c0_13 = arith.constant 0 : index
    %25 = vector.load %arg5[%c0_12, %c0_13] : memref<1x128xf32, #tpu.memory_space<vmem>>, vector<1x128xf32>
    %26 = vector.broadcast %25 : vector<1x128xf32> to vector<8x128xf32>
    %27 = arith.addf %24, %26 : vector<8x128xf32>
    %cst_14 = arith.constant 0.000000e+00 : f32
    %28 = vector.broadcast %cst_14 : f32 to vector<8x128xf32>
    %29 = arith.maximumf %27, %28 : vector<8x128xf32>
    %c0_15 = arith.constant 0 : index
    %c0_16 = arith.constant 0 : index
    %30 = vector.load %arg6[%c0_15, %c0_16] : memref<8x128xi32, #tpu.memory_space<vmem>>, vector<8x128xi32>
    %c-2147483648_i32 = arith.constant -2147483648 : i32
    %31 = vector.broadcast %c-2147483648_i32 : i32 to vector<8x128xi32>
    %32 = arith.cmpi uge, %30, %31 : vector<8x128xi32>
    %cst_17 = arith.constant 0.000000e+00 : f32
    %33 = vector.broadcast %cst_17 : f32 to vector<8x128xf32>
    %34 = arith.select %32, %29, %33 : vector<8x128xi1>, vector<8x128xf32>
    %c0_18 = arith.constant 0 : index
    %c0_19 = arith.constant 0 : index
    %35 = vector.load %arg7[%c0_18, %c0_19] : memref<8x128xf32, #tpu.memory_space<vmem>>, vector<8x128xf32>
    tpu.vector_store %arg7[%c0_18, %c0_19], %34 {strides = array<i32>} : memref<8x128xf32, #tpu.memory_space<vmem>>, vector<8x128xf32>,
    return
  }
  func.func @transform_0(%arg0: i32) -> (i32, i32) {
    %c0_i32 = arith.constant 0 : i32
    %c0_i32_0 = arith.constant 0 : i32
    %c0_i32_1 = arith.constant 0 : i32
    return %c0_i32, %c0_i32_0 : i32, i32
  }
  func.func @transform_1(%arg0: i32) -> (i32, i32) {
    %c0_i32 = arith.constant 0 : i32
    %c0_i32_0 = arith.constant 0 : i32
    return %arg0, %c0_i32 : i32, i32
  }
  func.func @transform_2(%arg0: i32) -> (i32, i32) {
    %c0_i32 = arith.constant 0 : i32
    %c0_i32_0 = arith.constant 0 : i32
    return %c0_i32, %arg0 : i32, i32
  }
  func.func @transform_3(%arg0: i32) -> (i32, i32) {
    %c0_i32 = arith.constant 0 : i32
    %c0_i32_0 = arith.constant 0 : i32
    return %c0_i32, %arg0 : i32, i32
  }
  func.func @transform_4(%arg0: i32) -> (i32, i32) {
    %c0_i32 = arith.constant 0 : i32
    %c0_i32_0 = arith.constant 0 : i32
    return %c0_i32, %arg0 : i32, i32
  }
  func.func @transform_5(%arg0: i32) -> (i32, i32) {
    %c0_i32 = arith.constant 0 : i32
    %c0_i32_0 = arith.constant 0 : i32
    return %c0_i32, %arg0 : i32, i32
  }
  func.func @transform_6(%arg0: i32) -> (i32, i32) {
    %c0_i32 = arith.constant 0 : i32
    %c0_i32_0 = arith.constant 0 : i32
    return %c0_i32, %arg0 : i32, i32
  }
}

</mosaic_0001>

<bundles_post_ra>
// kernel: tpu_custom_call.1
= control target key start
LH: loop header
LB: loop body
LE: loop exit
PB: predicated region body
PF: predicated region fallthrough
CT: control target
= control target key end

     0   :  { %v288_v1 = vmov 0.0   ;;  %vm89_vm0 = vcmask 261120   ;;  %vm289_vm1 = vmmov 0   ;;  %s377_s0 = inlined_call_operand.vmem [shape: bf16[8,32], index: 0, kind: input, shape index: {}]   ;;  %s378_s1 = inlined_call_operand.vmem [shape: bf16[128,32], index: 1, kind: input, shape index: {}]   ;;  %s379_s2 = inlined_call_operand.vmem [shape: f32[1,128], index: 2, kind: input, shape index: {}]   ;;  %s380_s3 = inlined_call_operand.vmem [shape: f32[1,128], index: 3, kind: input, shape index: {}]   ;;  %s381_s4 = inlined_call_operand.vmem [shape: f32[1,128], index: 4, kind: input, shape index: {}]   ;;  %s382_s5 = inlined_call_operand.vmem [shape: u32[8,128], index: 5, kind: input, shape index: {}]   ;;  %s383_s6 = inlined_call_operand.hbm [shape: f32[8,128], index: 6, kind: output, shape index: {}]  }
   0x1   :  { %v256_v0 = vld [vmem:[%s378_s1 + $0x38] sm:$0xff]   ;;  %233 = vmatprep.subr.bf16.mxu0 %v288_v1  ;;  %v257_v3 = vld [vmem:[%s378_s1 + $0x30] sm:$0xff]   ;;  %249 = vmatprep.mubr.msk.bf16.mxu0 %vm289_vm1, %v288_v1 }
   0x2   :  { %v115_v2 = vsel %vm89_vm0, %v256_v0, 0  ;;  %v112_v4 = vsel %vm89_vm0, %v257_v3, 0 }
   0x3   :  { %234 = vmatpush3.bf16.xpose.msra.mxu0 %v115_v2 }
   0x4   :  { %235 = vmatprep.subr.bf16.mxu0 %v288_v1 }
   0x5   :  { %11 = vsyncpa [#allocation3], 0  ;;  %v258_v5 = vld [vmem:[%s378_s1 + $0x28] sm:$0xff]   ;;  %v259_v7 = vld [vmem:[%s378_s1 + $0x20] sm:$0xff]   ;;  %s290_s20 = smov [#allocation2]  }
   0x6   :  { %v109_v6 = vsel %vm89_vm0, %v258_v5, 0  ;;  %v106_v8 = vsel %vm89_vm0, %v259_v7, 0  ;;  %v260_v9 = vld [vmem:[%s378_s1 + $0x18] sm:$0xff]   ;;  %v261_v11 = vld [vmem:[%s378_s1 + $0x10] sm:$0xff]   ;;  %v262_v13 = vld [vmem:[%s378_s1 + $0x8] sm:$0xff]   ;;  %s204_s21 = sshll.u32 %s290_s20, 4  ;;  %s205_s21 = int_to_ptr.vmem [resolvable:$true] %s204_s21 }
   0x7   :  { %v103_v10 = vsel %vm89_vm0, %v260_v9, 0  ;;  %v100_v12 = vsel %vm89_vm0, %v261_v11, 0  ;;  %v97_v14 = vsel %vm89_vm0, %v262_v13, 0  ;;  %v263_v15 = vld [vmem:[%s378_s1] sm:$0xff]   ;;  %s266_s22 = scalar_lea.vmem %s205_s21, 128  ;;  %p271_p1 = scmp.lt.s32.totalorder %s205_s21, %s205_s21 }
   0x8   :  { %v94_v16 = vsel %vm89_vm0, %v263_v15, 0  ;;  %v25_v17 = vld [vmem:[%s377_s0] sm:$0xf]  ;;  %p267_p0 = scmp.ne.s32.totalorder %s205_s21, %s266_s22  ;;  %p272_p2 = scmp.lt.s32.totalorder %s266_s22, %s266_s22 }
   0x9   :  { %v212_v18 = vld [vmem:[%s379_s2] ss:$0 sm:$0xff] }
   0xa   :  { %v222_v42 = vld [vmem:[%s380_s3] ss:$0 sm:$0xff]  ;;  %p273_p3 = por %p272_p2, %p271_p1 }
   0xb   :  { %236 = vmatpush3.bf16.xpose.msra.mxu0 %v112_v4  ;;  %v223_v44 = vld [vmem:[%s381_s4] ss:$0 sm:$0xff] }
   0xc   :  { %237 = vmatprep.subr.bf16.mxu0 %v288_v1  ;;  %v194_v46 = vld [vmem:[%s382_s5] sm:$0xff]  ;;  %p274_p4 = pnand %p273_p3, %p267_p0 }
   0xd   :  { %vm195_vm2 = vcmp.ge.u32.totalorder %v194_v46, 2147483648 }
  0x13   :  { %238 = vmatpush3.bf16.xpose.msra.mxu0 %v109_v6 }
  0x14   :  { %239 = vmatprep.subr.bf16.mxu0 %v288_v1 }
  0x1b   :  { %240 = vmatpush3.bf16.xpose.msra.mxu0 %v106_v8 }
  0x1c   :  { %241 = vmatprep.subr.bf16.mxu0 %v288_v1 }
  0x23   :  { %242 = vmatpush3.bf16.xpose.msra.mxu0 %v103_v10 }
  0x24   :  { %243 = vmatprep.subr.bf16.mxu0 %v288_v1 }
  0x2b   :  { %244 = vmatpush3.bf16.xpose.msra.mxu0 %v100_v12 }
  0x2c   :  { %245 = vmatprep.subr.bf16.mxu0 %v288_v1 }
  0x33   :  { %246 = vmatpush3.bf16.xpose.msra.mxu0 %v97_v14 }
  0x34   :  { %247 = vmatprep.subr.bf16.mxu0 %v288_v1 }
  0x3b   :  { %248 = vmatpush3.bf16.xpose.msra.mxu0 %v94_v16 }
  0x42   :  { %250 = vmatmul.mubr.msk.bf16.vlgmr.msra.gmra.mxu0 %vm89_vm0, %v25_v17 }
 0x102   :  { %v151_v19 = vpop.f32.mrf.mxu0 }
 0x103   :  { %v152_v20 = vadd.f32 %v212_v18, %v151_v19 }
 0x104   :  { %v251_v21 = vpop.f32.mrf.mxu0 }
 0x105   :  { %v157_v22 = vrot.slane %v152_v20, 4 }
 0x106   :  { %v154_v23 = vpop.f32.mrf.mxu0 }
 0x107   :  { %v158_v24 = vadd.f32 %v157_v22, %v152_v20 }
 0x108   :  { %v252_v25 = vpop.f32.mrf.mxu0 }
 0x109   :  { %v159_v26 = vrot.slane %v158_v24, 2 }
 0x10b   :  { %v160_v27 = vadd.f32 %v159_v26, %v158_v24 }
 0x10d   :  { %v161_v28 = vrot.slane %v160_v27, 1 }
 0x10f   :  { %v162_v29 = vadd.f32 %v161_v28, %v160_v27 }
 0x111   :  { %v164_v30 = vmul.f32 0.125, %v162_v29 }
 0x113   :  { %v165_v31 = vsub.f32 %v152_v20, %v164_v30 }
 0x115   :  { %v166_v32 = vmul.f32 %v165_v31, %v165_v31 }
 0x117   :  { %v167_v33 = vrot.slane %v166_v32, 4 }
 0x119   :  { %v168_v34 = vadd.f32 %v167_v33, %v166_v32 }
 0x11b   :  { %v169_v35 = vrot.slane %v168_v34, 2 }
 0x11d   :  { %v170_v36 = vadd.f32 %v169_v35, %v168_v34 }
 0x11f   :  { %v171_v37 = vrot.slane %v170_v36, 1 }
 0x121   :  { %v172_v38 = vadd.f32 %v171_v37, %v170_v36 }
 0x123   :  { %v173_v39 = vmul.f32 0.125, %v172_v38 }
 0x125   :  { %v174_v40 = vadd.f32 1e-05, %v173_v39 }
 0x127   :  { %264 = vrsqrt.f32 %v174_v40 }
 0x134   :  { %v265_v41 = vpop.eup %264 }
 0x135   :  { %v176_v43 = vmul.f32 %v265_v41, %v165_v31 }
 0x137   :  { %v184_v45 = vmul.f32 %v222_v42, %v176_v43 }
 0x139   :  { %v192_v47 = vadd.f32 %v223_v44, %v184_v45 }
 0x13b   :  { %v193_v48 = vmax.f32 %v192_v47, 0.0 }
 0x13d   :  { %v196_v49 = vsel %vm195_vm2, %v193_v48, 0.0 }
 0x13e   :  { %197 = vst [vmem:[#allocation2] sm:$0xff] %v196_v49 }
 0x13f   :  { %277 = shalt.err (!%p274_p4)
}
 0x140   :  { %207 = dma.vmem_to_hbm [thread:$0]  %s205_s21, 128, %s383_s6, [#allocation3]  }
 0x141   :  { %286 = dma.done.wait [#allocation3], 128  }
 0x142   :  { %287 = vsyncadd [#allocation3], 4294967168 }
 0x143   :  { %211 = vsyncpa [#allocation3], 1 }

</bundles_post_ra>
